<compile_context>
chip_gen: v5e
topology: v5e:2x2
jax: 0.10.0
libtpu: 0.0.40
codegen_flags: <defaults>
</compile_context>

<pallas_src>
import functools
import math

import jax
import jax.numpy as jnp
from jax import lax
from jax.experimental import pallas as pl
from jax.experimental.pallas import tpu as pltpu


def mha_kernel(src_ref, mask_ref, wq_ref, wk_ref, wv_ref, wo_ref, o_ref,
               *, tb, seq_len, n_head, d_k, d_v, scale):
    """One grid step per batch-block; all heads + TB batch rows fused.

    src_ref  : (TB, L, DM)        mask_ref : (TB, L, 1)
    wq_ref/wk_ref : (DM, H*dk)    wv_ref : (DM, H*dv)   wo_ref : (H*dk, DM)
    o_ref    : (TB, L, DM)
    """
    dm = src_ref.shape[-1]
    rows = tb * seq_len

    src = src_ref[...].reshape(rows, dm)        # (TB*L, DM)
    mask = mask_ref[...].reshape(rows, 1)       # (TB*L, 1) sublane column

    # Stacked projections: one wide MXU pass per tensor for ALL heads and ALL
    # batch rows in this block.  1/sqrt(dk) folded into Q.
    q = jnp.dot(src, wq_ref[...], preferred_element_type=jnp.float32) * scale
    k = jnp.dot(src, wk_ref[...], preferred_element_type=jnp.float32)
    v = jnp.dot(src, wv_ref[...], preferred_element_type=jnp.float32)
    # Key-side padding mask folded into V (exact: mask entries are 0/1).
    v = v * mask

    q3 = q.reshape(tb, seq_len, n_head * d_k)
    k3 = k.reshape(tb, seq_len, n_head * d_k)
    v3 = v.reshape(tb, seq_len, n_head * d_v)

    head_outs = []
    for h in range(n_head):                 # static unroll; n_head is small
        qh = q3[:, :, h * d_k:(h + 1) * d_k]     # (TB, L, dk)
        kh = k3[:, :, h * d_k:(h + 1) * d_k]
        vh = v3[:, :, h * d_v:(h + 1) * d_v]

        # s[b, i, j] = <q_i, k_j>: batched dot with contraction on the last
        # dims of both operands (no materialized transpose).
        s = lax.dot_general(qh, kh, (((2,), (2,)), ((0,), (0,))),
                            preferred_element_type=jnp.float32)   # (TB, L, L)

        # PyTorch nn.Softmax(dim=1) on (B, L, L): normalize over the QUERY
        # axis.  Exact divide (the approx reciprocal was the v2 mismatch).
        m = jnp.max(s, axis=1, keepdims=True)
        e = jnp.exp(s - m)
        p = e / jnp.sum(e, axis=1, keepdims=True)

        # Per-head attention output kept in registers (no VMEM scratch
        # round-trip, no masked 16-lane partial stores).
        head_outs.append(
            lax.dot_general(p, vh, (((2,), (1,)), ((0,), (0,))),
                            preferred_element_type=jnp.float32))  # (TB, L, dv)

    out_cat = jnp.concatenate(head_outs, axis=2).reshape(rows, n_head * d_v)
    out = jnp.dot(out_cat, wo_ref[...],
                  preferred_element_type=jnp.float32)             # (TB*L, DM)
    # Query-side padding mask, applied once after the fused output projection.
    out = out * mask
    o_ref[...] = out.reshape(tb, seq_len, dm).astype(o_ref.dtype)


def multi_head_attention(src, padding_mask, wq, wk, wv, wo, *, block_batch=None):
    b, l, dm = src.shape
    n_head, _, dk = wq.shape
    dv = wv.shape[-1]
    assert dk == dv, "PyTorch module requires d_k == d_v for the w_o matmul"

    # Batch blocking: pack TB batch elements per grid step so the projection
    # matmuls see TB*L rows.  Prefer the smallest divisor of B that reaches
    # >=128 rows (fills the MXU M-dim, keeps the block count high for
    # megacore); otherwise take the largest divisor.  Cap block rows to keep
    # the (TB*L, *) working set small in VMEM.
    if block_batch is None:
        divisors = [d for d in range(1, b + 1) if b % d == 0 and d * l <= 1024]
        reaching = [d for d in divisors if d * l >= 128]
        block_batch = min(reaching) if reaching else max(divisors)
    tb = block_batch
    assert b % tb == 0

    # Stack per-head weights lane-wise: (H, DM, d) -> (DM, H*d).  Column block
    # [h*d:(h+1)*d] of the stacked matrix is exactly head h's weight.
    wq_s = jnp.transpose(wq, (1, 0, 2)).reshape(dm, n_head * dk)
    wk_s = jnp.transpose(wk, (1, 0, 2)).reshape(dm, n_head * dk)
    wv_s = jnp.transpose(wv, (1, 0, 2)).reshape(dm, n_head * dv)
    # w_o is already (H*dk, DM) with rows grouped head-major (concat order).

    # Mask as (B, L, 1): already a sublane column in the consumed orientation.
    mask3 = padding_mask.astype(jnp.float32).reshape(b, l, 1)
    scale = 1.0 / math.sqrt(dk)

    kernel = functools.partial(mha_kernel, tb=tb, seq_len=l, n_head=n_head,
                               d_k=dk, d_v=dv, scale=scale)

    return pl.pallas_call(
        kernel,
        out_shape=jax.ShapeDtypeStruct((b, l, dm), jnp.float32),
        grid_spec=pltpu.PrefetchScalarGridSpec(
            num_scalar_prefetch=0,
            grid=(b // tb,),
            in_specs=[
                pl.BlockSpec((tb, l, dm), lambda i: (i, 0, 0)),        # src
                pl.BlockSpec((tb, l, 1), lambda i: (i, 0, 0)),         # mask
                # Weights: constant block index -> VMEM-resident, no re-DMA.
                pl.BlockSpec((dm, n_head * dk), lambda i: (0, 0)),     # w_q
                pl.BlockSpec((dm, n_head * dk), lambda i: (0, 0)),     # w_k
                pl.BlockSpec((dm, n_head * dv), lambda i: (0, 0)),     # w_v
                pl.BlockSpec((n_head * dk, dm), lambda i: (0, 0)),     # w_o
            ],
            out_specs=pl.BlockSpec((tb, l, dm), lambda i: (i, 0, 0)),
        ),
        compiler_params=pltpu.CompilerParams(
            dimension_semantics=("parallel",)),
    )(src, mask3, wq_s, wk_s, wv_s, wo)


def xavier_uniform(key, shape):
    fan_in, fan_out = shape[-2], shape[-1]
    bound = math.sqrt(6.0 / (fan_in + fan_out))
    return jax.random.uniform(key, shape, jnp.float32, -bound, bound)


def reference(src, padding_mask, wq, wk, wv, wo):
    """Pure-JAX re-implementation of the PyTorch forward (dec_inp=None)."""
    b, l, dm = src.shape
    n_head, _, dk = wq.shape
    mask = padding_mask.astype(jnp.float32)
    outs = []
    for h in range(n_head):
        q = src @ wq[h]
        k = src @ wk[h]
        v = src @ wv[h]
        s = jnp.einsum("bid,bjd->bij", q, k) / math.sqrt(dk)
        p = jax.nn.softmax(s, axis=1)                       # dim=1 softmax
        p = p * mask[:, :, None] * mask[:, None, :]
        outs.append(jnp.einsum("bij,bjd->bid", p, v))
    out_cat = jnp.concatenate(outs, axis=2)
    return out_cat @ wo


if __name__ == "__main__":
    B, L, DM, NH, DK, DV = 2, 8, 32, 4, 16, 16

    key = jax.random.PRNGKey(0)
    ks = jax.random.split(key, 6)
    src = jax.random.normal(ks[0], (B, L, DM), jnp.float32)
    padding_mask = (jax.random.uniform(ks[1], (B, L)) > 0.2).astype(jnp.float32)
    wq = xavier_uniform(ks[2], (NH, DM, DK))
    wk = xavier_uniform(ks[3], (NH, DM, DK))
    wv = xavier_uniform(ks[4], (NH, DM, DV))
    wo = xavier_uniform(ks[5], (NH * DK, DM))

    out = jax.block_until_ready(
        multi_head_attention(src, padding_mask, wq, wk, wv, wo))
    ref = reference(src, padding_mask, wq, wk, wv, wo)
    assert out.shape == (B, L, DM)
    assert jnp.allclose(out, ref, atol=1e-4, rtol=1e-4), "mismatch vs reference"
    print("KERNEL_OK")
</pallas_src>

<mosaic_0001>
module attributes {stable_mosaic.version = 11 : i64} {
  func.func @mha_kernel(%arg0: i32, %arg1: memref<2x8x32xf32, #tpu.memory_space<vmem>>, %arg2: memref<2x8x1xf32, #tpu.memory_space<vmem>>, %arg3: memref<32x64xf32, #tpu.memory_space<vmem>>, %arg4: memref<32x64xf32, #tpu.memory_space<vmem>>, %arg5: memref<32x64xf32, #tpu.memory_space<vmem>>, %arg6: memref<64x32xf32, #tpu.memory_space<vmem>>, %arg7: memref<2x8x32xf32, #tpu.memory_space<vmem>>) attributes {dimension_semantics = [#tpu.dimension_semantics<parallel>], iteration_bounds = array<i64: 1>, scalar_prefetch = 0 : i64, scratch_operands = 0 : i64, tpu.core_type = #tpu.core_type<tc>, window_params = [{transform_indices = @transform_0, window_bounds = array<i64: 2, 8, 32>}, {transform_indices = @transform_1, window_bounds = array<i64: 2, 8, 1>}, {pipeline_mode = #tpu.pipeline_mode<synchronous>, transform_indices = @transform_2, window_bounds = array<i64: 32, 64>}, {pipeline_mode = #tpu.pipeline_mode<synchronous>, transform_indices = @transform_3, window_bounds = array<i64: 32, 64>}, {pipeline_mode = #tpu.pipeline_mode<synchronous>, transform_indices = @transform_4, window_bounds = array<i64: 32, 64>}, {pipeline_mode = #tpu.pipeline_mode<synchronous>, transform_indices = @transform_5, window_bounds = array<i64: 64, 32>}, {transform_indices = @transform_6, window_bounds = array<i64: 2, 8, 32>}]} {
    %c0 = arith.constant 0 : index
    %c0_0 = arith.constant 0 : index
    %c0_1 = arith.constant 0 : index
    %0 = vector.load %arg1[%c0, %c0_0, %c0_1] : memref<2x8x32xf32, #tpu.memory_space<vmem>>, vector<2x8x32xf32>
    %1 = vector.shape_cast %0 : vector<2x8x32xf32> to vector<16x32xf32>
    %c0_2 = arith.constant 0 : index
    %c0_3 = arith.constant 0 : index
    %c0_4 = arith.constant 0 : index
    %2 = vector.load %arg2[%c0_2, %c0_3, %c0_4] : memref<2x8x1xf32, #tpu.memory_space<vmem>>, vector<2x8x1xf32>
    %3 = vector.shape_cast %2 : vector<2x8x1xf32> to vector<16x1xf32>
    %c0_5 = arith.constant 0 : index
    %c0_6 = arith.constant 0 : index
    %4 = vector.load %arg3[%c0_5, %c0_6] : memref<32x64xf32, #tpu.memory_space<vmem>>, vector<32x64xf32>
    %cst = arith.constant dense<0.000000e+00> : vector<16x64xf32>
    %5 = tpu.matmul %1, %4, %cst {dimension_numbers = #tpu.dot_dimension_numbers<[1], [0], [0], [1], [0, 0, 1, 1], [], []>} : vector<16x32xf32>, vector<32x64xf32>, vector<16x64xf32> -> vector<16x64xf32>
    %cst_7 = arith.constant 2.500000e-01 : f32
    %6 = vector.broadcast %cst_7 : f32 to vector<16x64xf32>
    %7 = arith.mulf %5, %6 : vector<16x64xf32>
    %c0_8 = arith.constant 0 : index
    %c0_9 = arith.constant 0 : index
    %8 = vector.load %arg4[%c0_8, %c0_9] : memref<32x64xf32, #tpu.memory_space<vmem>>, vector<32x64xf32>
    %cst_10 = arith.constant dense<0.000000e+00> : vector<16x64xf32>
    %9 = tpu.matmul %1, %8, %cst_10 {dimension_numbers = #tpu.dot_dimension_numbers<[1], [0], [0], [1], [0, 0, 1, 1], [], []>} : vector<16x32xf32>, vector<32x64xf32>, vector<16x64xf32> -> vector<16x64xf32>
    %c0_11 = arith.constant 0 : index
    %c0_12 = arith.constant 0 : index
    %10 = vector.load %arg5[%c0_11, %c0_12] : memref<32x64xf32, #tpu.memory_space<vmem>>, vector<32x64xf32>
    %cst_13 = arith.constant dense<0.000000e+00> : vector<16x64xf32>
    %11 = tpu.matmul %1, %10, %cst_13 {dimension_numbers = #tpu.dot_dimension_numbers<[1], [0], [0], [1], [0, 0, 1, 1], [], []>} : vector<16x32xf32>, vector<32x64xf32>, vector<16x64xf32> -> vector<16x64xf32>
    %12 = vector.broadcast %3 : vector<16x1xf32> to vector<16x64xf32>
    %13 = arith.mulf %11, %12 : vector<16x64xf32>
    %14 = vector.shape_cast %7 : vector<16x64xf32> to vector<2x8x64xf32>
    %15 = vector.shape_cast %9 : vector<16x64xf32> to vector<2x8x64xf32>
    %16 = vector.shape_cast %13 : vector<16x64xf32> to vector<2x8x64xf32>
    %17 = vector.extract_strided_slice %14 {offsets = [0, 0, 0], sizes = [2, 8, 16], strides = [1, 1, 1]} : vector<2x8x64xf32> to vector<2x8x16xf32>
    %18 = vector.extract_strided_slice %15 {offsets = [0, 0, 0], sizes = [2, 8, 16], strides = [1, 1, 1]} : vector<2x8x64xf32> to vector<2x8x16xf32>
    %19 = vector.extract_strided_slice %16 {offsets = [0, 0, 0], sizes = [2, 8, 16], strides = [1, 1, 1]} : vector<2x8x64xf32> to vector<2x8x16xf32>
    %cst_14 = arith.constant dense<0.000000e+00> : vector<2x8x8xf32>
    %20 = tpu.matmul %17, %18, %cst_14 {dimension_numbers = #tpu.dot_dimension_numbers<[2], [2], [1], [1], [0, 0, 0, 1, 1, 1], [0], [0]>} : vector<2x8x16xf32>, vector<2x8x16xf32>, vector<2x8x8xf32> -> vector<2x8x8xf32>
    %cst_15 = arith.constant dense<0xFF800000> : vector<2x8xf32>
    %21 = vector.multi_reduction <maximumf>, %20, %cst_15 [1] : vector<2x8x8xf32> to vector<2x8xf32>
    %22 = vector.shape_cast %21 : vector<2x8xf32> to vector<2x1x8xf32>
    %23 = vector.broadcast %22 : vector<2x1x8xf32> to vector<2x8x8xf32>
    %24 = arith.subf %20, %23 : vector<2x8x8xf32>
    %25 = math.exp %24 : vector<2x8x8xf32>
    %cst_16 = arith.constant dense<0.000000e+00> : vector<2x8xf32>
    %26 = vector.multi_reduction <add>, %25, %cst_16 [1] : vector<2x8x8xf32> to vector<2x8xf32>
    %27 = vector.shape_cast %26 : vector<2x8xf32> to vector<2x1x8xf32>
    %28 = vector.broadcast %27 : vector<2x1x8xf32> to vector<2x8x8xf32>
    %29 = arith.divf %25, %28 : vector<2x8x8xf32>
    %cst_17 = arith.constant dense<0.000000e+00> : vector<2x8x16xf32>
    %30 = tpu.matmul %29, %19, %cst_17 {dimension_numbers = #tpu.dot_dimension_numbers<[2], [1], [1], [2], [0, 0, 0, 1, 1, 2], [0], [0]>} : vector<2x8x8xf32>, vector<2x8x16xf32>, vector<2x8x16xf32> -> vector<2x8x16xf32>
    %31 = vector.extract_strided_slice %14 {offsets = [0, 0, 16], sizes = [2, 8, 16], strides = [1, 1, 1]} : vector<2x8x64xf32> to vector<2x8x16xf32>
    %32 = vector.extract_strided_slice %15 {offsets = [0, 0, 16], sizes = [2, 8, 16], strides = [1, 1, 1]} : vector<2x8x64xf32> to vector<2x8x16xf32>
    %33 = vector.extract_strided_slice %16 {offsets = [0, 0, 16], sizes = [2, 8, 16], strides = [1, 1, 1]} : vector<2x8x64xf32> to vector<2x8x16xf32>
    %cst_18 = arith.constant dense<0.000000e+00> : vector<2x8x8xf32>
    %34 = tpu.matmul %31, %32, %cst_18 {dimension_numbers = #tpu.dot_dimension_numbers<[2], [2], [1], [1], [0, 0, 0, 1, 1, 1], [0], [0]>} : vector<2x8x16xf32>, vector<2x8x16xf32>, vector<2x8x8xf32> -> vector<2x8x8xf32>
    %cst_19 = arith.constant dense<0xFF800000> : vector<2x8xf32>
    %35 = vector.multi_reduction <maximumf>, %34, %cst_19 [1] : vector<2x8x8xf32> to vector<2x8xf32>
    %36 = vector.shape_cast %35 : vector<2x8xf32> to vector<2x1x8xf32>
    %37 = vector.broadcast %36 : vector<2x1x8xf32> to vector<2x8x8xf32>
    %38 = arith.subf %34, %37 : vector<2x8x8xf32>
    %39 = math.exp %38 : vector<2x8x8xf32>
    %cst_20 = arith.constant dense<0.000000e+00> : vector<2x8xf32>
    %40 = vector.multi_reduction <add>, %39, %cst_20 [1] : vector<2x8x8xf32> to vector<2x8xf32>
    %41 = vector.shape_cast %40 : vector<2x8xf32> to vector<2x1x8xf32>
    %42 = vector.broadcast %41 : vector<2x1x8xf32> to vector<2x8x8xf32>
    %43 = arith.divf %39, %42 : vector<2x8x8xf32>
    %cst_21 = arith.constant dense<0.000000e+00> : vector<2x8x16xf32>
    %44 = tpu.matmul %43, %33, %cst_21 {dimension_numbers = #tpu.dot_dimension_numbers<[2], [1], [1], [2], [0, 0, 0, 1, 1, 2], [0], [0]>} : vector<2x8x8xf32>, vector<2x8x16xf32>, vector<2x8x16xf32> -> vector<2x8x16xf32>
    %45 = vector.extract_strided_slice %14 {offsets = [0, 0, 32], sizes = [2, 8, 16], strides = [1, 1, 1]} : vector<2x8x64xf32> to vector<2x8x16xf32>
    %46 = vector.extract_strided_slice %15 {offsets = [0, 0, 32], sizes = [2, 8, 16], strides = [1, 1, 1]} : vector<2x8x64xf32> to vector<2x8x16xf32>
    %47 = vector.extract_strided_slice %16 {offsets = [0, 0, 32], sizes = [2, 8, 16], strides = [1, 1, 1]} : vector<2x8x64xf32> to vector<2x8x16xf32>
    %cst_22 = arith.constant dense<0.000000e+00> : vector<2x8x8xf32>
    %48 = tpu.matmul %45, %46, %cst_22 {dimension_numbers = #tpu.dot_dimension_numbers<[2], [2], [1], [1], [0, 0, 0, 1, 1, 1], [0], [0]>} : vector<2x8x16xf32>, vector<2x8x16xf32>, vector<2x8x8xf32> -> vector<2x8x8xf32>
    %cst_23 = arith.constant dense<0xFF800000> : vector<2x8xf32>
    %49 = vector.multi_reduction <maximumf>, %48, %cst_23 [1] : vector<2x8x8xf32> to vector<2x8xf32>
    %50 = vector.shape_cast %49 : vector<2x8xf32> to vector<2x1x8xf32>
    %51 = vector.broadcast %50 : vector<2x1x8xf32> to vector<2x8x8xf32>
    %52 = arith.subf %48, %51 : vector<2x8x8xf32>
    %53 = math.exp %52 : vector<2x8x8xf32>
    %cst_24 = arith.constant dense<0.000000e+00> : vector<2x8xf32>
    %54 = vector.multi_reduction <add>, %53, %cst_24 [1] : vector<2x8x8xf32> to vector<2x8xf32>
    %55 = vector.shape_cast %54 : vector<2x8xf32> to vector<2x1x8xf32>
    %56 = vector.broadcast %55 : vector<2x1x8xf32> to vector<2x8x8xf32>
    %57 = arith.divf %53, %56 : vector<2x8x8xf32>
    %cst_25 = arith.constant dense<0.000000e+00> : vector<2x8x16xf32>
    %58 = tpu.matmul %57, %47, %cst_25 {dimension_numbers = #tpu.dot_dimension_numbers<[2], [1], [1], [2], [0, 0, 0, 1, 1, 2], [0], [0]>} : vector<2x8x8xf32>, vector<2x8x16xf32>, vector<2x8x16xf32> -> vector<2x8x16xf32>
    %59 = vector.extract_strided_slice %14 {offsets = [0, 0, 48], sizes = [2, 8, 16], strides = [1, 1, 1]} : vector<2x8x64xf32> to vector<2x8x16xf32>
    %60 = vector.extract_strided_slice %15 {offsets = [0, 0, 48], sizes = [2, 8, 16], strides = [1, 1, 1]} : vector<2x8x64xf32> to vector<2x8x16xf32>
    %61 = vector.extract_strided_slice %16 {offsets = [0, 0, 48], sizes = [2, 8, 16], strides = [1, 1, 1]} : vector<2x8x64xf32> to vector<2x8x16xf32>
    %cst_26 = arith.constant dense<0.000000e+00> : vector<2x8x8xf32>
    %62 = tpu.matmul %59, %60, %cst_26 {dimension_numbers = #tpu.dot_dimension_numbers<[2], [2], [1], [1], [0, 0, 0, 1, 1, 1], [0], [0]>} : vector<2x8x16xf32>, vector<2x8x16xf32>, vector<2x8x8xf32> -> vector<2x8x8xf32>
    %cst_27 = arith.constant dense<0xFF800000> : vector<2x8xf32>
    %63 = vector.multi_reduction <maximumf>, %62, %cst_27 [1] : vector<2x8x8xf32> to vector<2x8xf32>
    %64 = vector.shape_cast %63 : vector<2x8xf32> to vector<2x1x8xf32>
    %65 = vector.broadcast %64 : vector<2x1x8xf32> to vector<2x8x8xf32>
    %66 = arith.subf %62, %65 : vector<2x8x8xf32>
    %67 = math.exp %66 : vector<2x8x8xf32>
    %cst_28 = arith.constant dense<0.000000e+00> : vector<2x8xf32>
    %68 = vector.multi_reduction <add>, %67, %cst_28 [1] : vector<2x8x8xf32> to vector<2x8xf32>
    %69 = vector.shape_cast %68 : vector<2x8xf32> to vector<2x1x8xf32>
    %70 = vector.broadcast %69 : vector<2x1x8xf32> to vector<2x8x8xf32>
    %71 = arith.divf %67, %70 : vector<2x8x8xf32>
    %cst_29 = arith.constant dense<0.000000e+00> : vector<2x8x16xf32>
    %72 = tpu.matmul %71, %61, %cst_29 {dimension_numbers = #tpu.dot_dimension_numbers<[2], [1], [1], [2], [0, 0, 0, 1, 1, 2], [0], [0]>} : vector<2x8x8xf32>, vector<2x8x16xf32>, vector<2x8x16xf32> -> vector<2x8x16xf32>
    %73 = tpu.concatenate %30, %44, %58, %72 in 2 : vector<2x8x16xf32>, vector<2x8x16xf32>, vector<2x8x16xf32>, vector<2x8x16xf32> -> vector<2x8x64xf32>
    %74 = vector.shape_cast %73 : vector<2x8x64xf32> to vector<16x64xf32>
    %c0_30 = arith.constant 0 : index
    %c0_31 = arith.constant 0 : index
    %75 = vector.load %arg6[%c0_30, %c0_31] : memref<64x32xf32, #tpu.memory_space<vmem>>, vector<64x32xf32>
    %cst_32 = arith.constant dense<0.000000e+00> : vector<16x32xf32>
    %76 = tpu.matmul %74, %75, %cst_32 {dimension_numbers = #tpu.dot_dimension_numbers<[1], [0], [0], [1], [0, 0, 1, 1], [], []>} : vector<16x64xf32>, vector<64x32xf32>, vector<16x32xf32> -> vector<16x32xf32>
    %77 = vector.broadcast %3 : vector<16x1xf32> to vector<16x32xf32>
    %78 = arith.mulf %76, %77 : vector<16x32xf32>
    %79 = vector.shape_cast %78 : vector<16x32xf32> to vector<2x8x32xf32>
    %c0_33 = arith.constant 0 : index
    %c0_34 = arith.constant 0 : index
    %c0_35 = arith.constant 0 : index
    %80 = vector.load %arg7[%c0_33, %c0_34, %c0_35] : memref<2x8x32xf32, #tpu.memory_space<vmem>>, vector<2x8x32xf32>
    tpu.vector_store %arg7[%c0_33, %c0_34, %c0_35], %79 {strides = array<i32>} : memref<2x8x32xf32, #tpu.memory_space<vmem>>, vector<2x8x32xf32>,
    return
  }
  func.func @transform_0(%arg0: i32) -> (i32, i32, i32) {
    %c0_i32 = arith.constant 0 : i32
    %c0_i32_0 = arith.constant 0 : i32
    %c0_i32_1 = arith.constant 0 : i32
    return %arg0, %c0_i32, %c0_i32_0 : i32, i32, i32
  }
  func.func @transform_1(%arg0: i32) -> (i32, i32, i32) {
    %c0_i32 = arith.constant 0 : i32
    %c0_i32_0 = arith.constant 0 : i32
    %c0_i32_1 = arith.constant 0 : i32
    return %arg0, %c0_i32, %c0_i32_0 : i32, i32, i32
  }
  func.func @transform_2(%arg0: i32) -> (i32, i32) {
    %c0_i32 = arith.constant 0 : i32
    %c0_i32_0 = arith.constant 0 : i32
    %c0_i32_1 = arith.constant 0 : i32
    return %c0_i32, %c0_i32_0 : i32, i32
  }
  func.func @transform_3(%arg0: i32) -> (i32, i32) {
    %c0_i32 = arith.constant 0 : i32
    %c0_i32_0 = arith.constant 0 : i32
    %c0_i32_1 = arith.constant 0 : i32
    return %c0_i32, %c0_i32_0 : i32, i32
  }
  func.func @transform_4(%arg0: i32) -> (i32, i32) {
    %c0_i32 = arith.constant 0 : i32
    %c0_i32_0 = arith.constant 0 : i32
    %c0_i32_1 = arith.constant 0 : i32
    return %c0_i32, %c0_i32_0 : i32, i32
  }
  func.func @transform_5(%arg0: i32) -> (i32, i32) {
    %c0_i32 = arith.constant 0 : i32
    %c0_i32_0 = arith.constant 0 : i32
    %c0_i32_1 = arith.constant 0 : i32
    return %c0_i32, %c0_i32_0 : i32, i32
  }
  func.func @transform_6(%arg0: i32) -> (i32, i32, i32) {
    %c0_i32 = arith.constant 0 : i32
    %c0_i32_0 = arith.constant 0 : i32
    %c0_i32_1 = arith.constant 0 : i32
    return %arg0, %c0_i32, %c0_i32_0 : i32, i32, i32
  }
}

</mosaic_0001>

<bundles_post_ra>
// kernel: tpu_custom_call.1
= control target key start
LH: loop header
LB: loop body
LE: loop exit
PB: predicated region body
PF: predicated region fallthrough
CT: control target
= control target key end

     0   :  { %s1227_s0 = inlined_call_operand.vmem [shape: f32[2,8,32], index: 0, kind: input, shape index: {}]   ;;  %s1228_s1 = inlined_call_operand.vmem [shape: f32[2,8,1], index: 1, kind: input, shape index: {}]   ;;  %s1229_s2 = inlined_call_operand.vmem [shape: f32[32,64], index: 2, kind: input, shape index: {}]   ;;  %s1230_s3 = inlined_call_operand.vmem [shape: f32[32,64], index: 3, kind: input, shape index: {}]   ;;  %s1231_s4 = inlined_call_operand.vmem [shape: f32[32,64], index: 4, kind: input, shape index: {}]   ;;  %s1232_s5 = inlined_call_operand.vmem [shape: f32[64,32], index: 5, kind: input, shape index: {}]   ;;  %s1233_s6 = inlined_call_operand.hbm [shape: f32[2,8,32], index: 6, kind: output, shape index: {}]  }
   0x1   :  { %v67_v0 = vld [vmem:[%s1230_s3 + $0x18] sm:$0xff]  ;;  %v66_v1 = vld [vmem:[%s1230_s3 + $0x10] sm:$0xff]  ;;  %v65_v3 = vld [vmem:[%s1230_s3 + $0x8] sm:$0xff] }
   0x2   :  { %80 = vmatpush.msra.mxu2 %v67_v0  ;;  %v31_v2 = vld [vmem:[%s1229_s2 + $0x18] sm:$0xff]  ;;  %v30_v4 = vld [vmem:[%s1229_s2 + $0x10] sm:$0xff]  ;;  %v29_v5 = vld [vmem:[%s1229_s2 + $0x8] sm:$0xff] }
   0x3   :  { %51 = vmatpush.msra.mxu0 %v31_v2 }
   0x4   :  { %81 = vmatpush.msra.mxu2 %v66_v1 }
   0x5   :  { %11 = vsyncpa [#allocation3], 0  ;;  %v64_v6 = vld [vmem:[%s1230_s3] sm:$0xff]  ;;  %52 = vmatpush.msra.mxu0 %v30_v4  ;;  %vm32_vm0 = vcmask 261120   ;;  %v25_v9 = vld [vmem:[%s1227_s0 + $0x8] sm:$0xff]  ;;  %vm130_vm1 = vcmask 130048  }
   0x6   :  { %82 = vmatpush.msra.mxu2 %v65_v3  ;;  %v24_v7 = vld [vmem:[%s1227_s0] sm:$0xff]  ;;  %s1005_s16 = smov 96   ;;  %v94_v13 = vld [vmem:[%s1231_s4 + $0x18] sm:$0xff]  ;;  %v93_v14 = vld [vmem:[%s1231_s4 + $0x10] sm:$0xff]  ;;  %v1007_v16 = vmov 0   ;;  %vm183_vm2 = vcmask 64512  }
   0x7   :  { %v28_v8 = vld [vmem:[%s1229_s2] sm:$0xff]  ;;  %53 = vmatpush.msra.mxu0 %v29_v5  ;;  %s1006_s2 = smov 112   ;;  %v92_v15 = vld [vmem:[%s1231_s4 + $0x8] sm:$0xff]  ;;  %945 = vset.pattern.permute.xlu0 %v1007_v16  ;;  %s1010_s28 = smov 32  }
   0x8   :  { %83 = vmatpush.msra.mxu2 %v64_v6  ;;  %946 = vset.pattern.permute.xlu1 %v1007_v16  ;;  %v91_v17 = vld [vmem:[%s1231_s4] sm:$0xff]  ;;  %s1008_s4 = smov 80   ;;  %v27_v22 = vld [vmem:[%s1228_s1 + $0x8] sm:$0xff]  ;;  %s1011_s29 = smov 48  }
   0x9   :  { %905 = vmatmul.msk.f32.vlgmr.msra.gmra.mxu2 %vm32_vm0, %v24_v7  ;;  %54 = vmatpush.msra.mxu0 %v28_v8  ;;  %v26_v21 = vld [vmem:[%s1228_s1] sm:$0xff]  ;;  %s1009_s1 = smov 16   ;;  %s891_s22 = sshll.u32 %s1233_s6, 4  ;;  %s892_s22 = int_to_ptr.hbm [resolvable:$true] %s891_s22 }
   0xa   :  { %903 = vmatmul.msk.f32.vlgmr.msra.gmra.mxu0 %vm32_vm0, %v24_v7  ;;  %107 = vmatpush.msrb.mxu2 %v94_v13  ;;  %s1013_s23 = smov 128  }
   0xc   :  { %108 = vmatpush.msrb.mxu2 %v93_v14 }
   0xe   :  { %109 = vmatpush.msrb.mxu2 %v92_v15 }
  0x10   :  { %110 = vmatpush.msrb.mxu2 %v91_v17 }
  0x11   :  { %906 = vmatmul.msk.f32.gmra.mxu2 %vm32_vm0, %v25_v9 }
  0x12   :  { %904 = vmatmul.msk.f32.gmra.mxu0 %vm32_vm0, %v25_v9 }
  0x19   :  { %907 = vmatmul.msk.f32.vlgmr.msrb.gmra.mxu2 %vm32_vm0, %v24_v7 }
  0x21   :  { %908 = vmatmul.msk.f32.gmra.mxu2 %vm32_vm0, %v25_v9 }
  0x87   :  { %v56_v10 = vpop.f32.mrf.mxu0 }
  0x88   :  { %v62_v12 = vmul.f32 0.25, %v56_v10 }
  0x8c   :  { %v85_v11 = vpop.f32.mrf.mxu2 }
  0x8d   :  { %470 = vrot.lane.b32.xlu2 %v85_v11, %s1005_s16  ;;  %296 = vrot.lane.b32.xlu0 %v85_v11, %s1006_s2 }
  0x8e   :  { %909 = vmatpush.xpose.msk.msra.mxu3 %vm130_vm1, %v85_v11 }
  0x8f   :  { %v59_v18 = vpop.f32.mrf.mxu0 }
  0x90   :  { %v63_v20 = vmul.f32 0.25, %v59_v18 }
  0x91   :  { %910 = vmatmul.msk.f32.vlgmr.msra.gmra.mxu3 %vm130_vm1, %v62_v12 }
  0x94   :  { %v88_v19 = vpop.f32.mrf.mxu2 }
  0x95   :  { %324 = vrot.lane.b32.xlu1 %v88_v19, %s1006_s2  ;;  %911 = vmatpush.xpose.msk.msrb.mxu3 %vm130_vm1, %v88_v19 }
  0x96   :  { %468 = vrot.lane.b32.xlu2 %v62_v12, %s1005_s16  ;;  %294 = vrot.lane.b32.xlu0 %v62_v12, %s1006_s2 }
  0x99   :  { %912 = vmatmul.msk.f32.vlgmr.msrb.gmra.mxu3 %vm130_vm1, %v63_v20 }
  0x9c   :  { %v112_v53 = vpop.f32.mrf.mxu2 }
  0x9d   :  { %322 = vrot.lane.b32.xlu1 %v63_v20, %s1006_s2 }
  0x9e   :  { %498 = vrot.lane.b32.xlu0 %v88_v19, %s1005_s16  ;;  %496 = vrot.lane.b32.xlu2 %v63_v20, %s1005_s16 }
  0xa4   :  { %v115_v63 = vpop.f32.mrf.mxu2 }
  0xa5   :  { %642 = vrot.lane.b32.xlu1 %v85_v11, %s1008_s4 }
  0xa6   :  { %640 = vrot.lane.b32.xlu0 %v62_v12, %s1008_s4  ;;  %668 = vrot.lane.b32.xlu2 %v63_v20, %s1008_s4 }
  0xad   :  { %670 = vrot.lane.b32.xlu1 %v88_v19, %s1008_s4 }
  0xae   :  { %120 = vperm.xlu0 %945, %v26_v21  }
  0xb5   :  { %125 = vperm.xlu1 %946, %v27_v22  }
  0xe7   :  { %v471_v23 = vpop.permute.xlu2 %470 }
  0xf0   :  { %v469_v27 = vpop.permute.xlu2 %468 }
  0xf8   :  { %v497_v30 = vpop.permute.xlu2 %496 }
  0xff   :  { %v297_v24 = vpop.permute.xlu0 %296 }
 0x100   :  { %915 = vmatpush.xpose.msk.msra.mxu1 %vm130_vm1, %v297_v24  ;;  %v669_v46 = vpop.permute.xlu2 %668 }
 0x107   :  { %v325_v25 = vpop.permute.xlu1 %324 }
 0x108   :  { %v295_v26 = vpop.permute.xlu0 %294  ;;  %917 = vmatpush.xpose.msk.msrb.mxu1 %vm130_vm1, %v325_v25 }
 0x109   :  { %916 = vmatmul.msk.f32.vlgmr.msra.gmra.mxu1 %vm130_vm1, %v295_v26 }
 0x10c   :  { %921 = vmatpush.xpose.msk.msra.mxu1 %vm130_vm1, %v471_v23 }
 0x10f   :  { %v323_v28 = vpop.permute.xlu1 %322 }
 0x110   :  { %v499_v29 = vpop.permute.xlu0 %498 }
 0x111   :  { %918 = vmatmul.msk.f32.vlgmr.msrb.gmra.mxu1 %vm130_vm1, %v323_v28  ;;  %923 = vmatpush.xpose.msk.msra.mxu2 %vm130_vm1, %v499_v29 }
 0x114   :  { %v154_v31 = vpop.f32.mrf.mxu3  ;;  %924 = vmatmul.msk.f32.vlgmr.msra.gmra.mxu2 %vm130_vm1, %v497_v30 }
 0x115   :  { %v184_v32 = vsel %vm183_vm2, %v154_v31, -inf }
 0x116   :  { %v185_v33 = vrot.slane %v184_v32, 4 }
 0x117   :  { %v643_v34 = vpop.permute.xlu1 %642 }
 0x118   :  { %v186_v35 = vmax.f32 %v184_v32, %v185_v33  ;;  %927 = vmatpush.xpose.msk.msrb.mxu1 %vm130_vm1, %v643_v34  ;;  %v641_v44 = vpop.permute.xlu0 %640 }
 0x119   :  { %922 = vmatmul.msk.f32.vlgmr.msra.gmra.mxu1 %vm130_vm1, %v469_v27 }
 0x11a   :  { %v187_v36 = vrot.slane %v186_v35, 2 }
 0x11c   :  { %v188_v37 = vmax.f32 %v186_v35, %v187_v36  ;;  %v180_v38 = vpop.f32.mrf.mxu3 }
 0x11d   :  { %v191_v39 = vsel %vm183_vm2, %v180_v38, -inf }
 0x11e   :  { %v189_v40 = vrot.slane %v188_v37, 1  ;;  %v192_v41 = vrot.slane %v191_v39, 4 }
 0x11f   :  { %v671_v42 = vpop.permute.xlu1 %670 }
 0x120   :  { %v190_v43 = vmax.f32 %v188_v37, %v189_v40  ;;  %v193_v45 = vmax.f32 %v191_v39, %v192_v41  ;;  %929 = vmatpush.xpose.msk.msrb.mxu2 %vm130_vm1, %v671_v42  ;;  %v1134_v54 = vpop.permute.xlu0 %120 }
 0x121   :  { %928 = vmatmul.msk.f32.vlgmr.msrb.gmra.mxu1 %vm130_vm1, %v641_v44  ;;  %v128_v56 = vmul.f32 %v1134_v54, %v112_v53 }
 0x122   :  { %v198_v47 = vsub.f32 %v154_v31, %v190_v43  ;;  %v194_v48 = vrot.slane %v193_v45, 2 }
 0x123   :  { %930 = vmatmul.msk.f32.vlgmr.msrb.gmra.mxu2 %vm130_vm1, %v669_v46  ;;  %588 = vrot.lane.b32.xlu1 %v128_v56, %s1005_s16 }
 0x124   :  { %v200_v49 = vmul.f32 1.442695, %v198_v47  ;;  %v195_v50 = vmax.f32 %v193_v45, %v194_v48  ;;  %266 = vmatpush.msra.mxu3 %v128_v56  ;;  %415 = vrot.lane.b32.xlu2 %v128_v56, %s1006_s2 }
 0x125   :  { %760 = vrot.lane.b32.xlu0 %v128_v56, %s1008_s4 }
 0x126   :  { %947 = vpow2.f32 %v200_v49  ;;  %v196_v51 = vrot.slane %v195_v50, 1 }
 0x127   :  { %v1141_v61 = vpop.permute.xlu1 %125 }
 0x128   :  { %v197_v52 = vmax.f32 %v195_v50, %v196_v51  ;;  %v129_v1 = vmul.f32 %v1141_v61, %v115_v63 }
 0x12a   :  { %v199_v55 = vsub.f32 %v180_v38, %v197_v52  ;;  %289 = vmatpush.msrb.mxu0 %v129_v1 }
 0x12b   :  { %614 = vrot.lane.b32.xlu1 %v129_v1, %s1005_s16 }
 0x12c   :  { %v948_v57 = vpop.eup %947  ;;  %v202_v58 = vmul.f32 1.442695, %v199_v55  ;;  %442 = vrot.lane.b32.xlu2 %v129_v1, %s1006_s2 }
 0x12d   :  { %v204_v59 = vsel %vm183_vm2, %v948_v57, 0.0 }
 0x12e   :  { %v205_v60 = vrot.slane %v204_v59, 4  ;;  %949 = vpow2.f32 %v202_v58 }
 0x130   :  { %v206_v62 = vadd.f32 %v205_v60, %v204_v59 }
 0x132   :  { %v207_v0 = vrot.slane %v206_v62, 2 }
 0x134   :  { %v950_v2 = vpop.eup %949  ;;  %v208_v3 = vadd.f32 %v207_v0, %v206_v62  ;;  %786 = vrot.lane.b32.xlu2 %v129_v1, %s1008_s4  ;;  %s1014_s4 = smov 8  }
 0x135   :  { %v211_v4 = vsel %vm183_vm2, %v950_v2, 0.0 }
 0x136   :  { %v209_v5 = vrot.slane %v208_v3, 1  ;;  %v212_v6 = vrot.slane %v211_v4, 4 }
 0x138   :  { %v210_v7 = vadd.f32 %v209_v5, %v208_v3  ;;  %v213_v8 = vadd.f32 %v212_v6, %v211_v4 }
 0x13a   :  { %951 = vrcp.f32 %v210_v7  ;;  %v214_v9 = vrot.slane %v213_v8, 2  ;;  %v229_v16 = vand.u32 2147483648, %v210_v7  ;;  %v227_v18 = vand.u32 2147483647, %v210_v7 }
 0x13b   :  { %vm223_vm4 = vweird.f32 %v210_v7 }
 0x13c   :  { %v215_v10 = vadd.f32 %v214_v9, %v213_v8  ;;  %v230_v20 = vor.u32 1.1754944e-38, %v229_v16  ;;  %vm228_vm6 = vcmp.eq.f32.partialorder %v227_v18, 8.507059e+37 }
 0x13e   :  { %v216_v11 = vrot.slane %v215_v10, 1 }
 0x140   :  { %v952_v12 = vpop.eup %951  ;;  %v217_v14 = vadd.f32 %v216_v11, %v215_v10 }
 0x141   :  { %v219_v13 = vmul.f32 %v952_v12, %v210_v7  ;;  %vm224_vm3 = vweird.f32 %v952_v12 }
 0x142   :  { %953 = vrcp.f32 %v217_v14  ;;  %vm225_vm5 = vmor %vm223_vm4, %vm224_vm3  ;;  %v244_v27 = vand.u32 2147483648, %v217_v14  ;;  %v242_v29 = vand.u32 2147483647, %v217_v14  ;;  %vm238_vm8 = vweird.f32 %v217_v14 }
 0x143   :  { %v220_v15 = vsub.f32 1.0, %v219_v13 }
 0x144   :  { %v245_v31 = vor.u32 1.1754944e-38, %v244_v27  ;;  %vm243_vm10 = vcmp.eq.f32.partialorder %v242_v29, 8.507059e+37 }
 0x145   :  { %v221_v17 = vmul.f32 %v952_v12, %v220_v15 }
 0x147   :  { %v222_v19 = vadd.f32 %v952_v12, %v221_v17 }
 0x148   :  { %v954_v21 = vpop.eup %953 }
 0x149   :  { %v226_v22 = vsel %vm225_vm5, %v952_v12, %v222_v19  ;;  %v234_v24 = vmul.f32 %v954_v21, %v217_v14  ;;  %vm239_vm7 = vweird.f32 %v954_v21 }
 0x14a   :  { %v231_v23 = vsel %vm228_vm6, %v230_v20, %v226_v22  ;;  %vm240_vm9 = vmor %vm238_vm8, %vm239_vm7 }
 0x14b   :  { %v232_v25 = vmul.f32 %v948_v57, %v231_v23  ;;  %v235_v26 = vsub.f32 1.0, %v234_v24 }
 0x14d   :  { %913 = vmatmul.msk.f32.vlgmr.msra.gmra.mxu3 %vm183_vm2, %v232_v25  ;;  %v236_v28 = vmul.f32 %v954_v21, %v235_v26 }
 0x14f   :  { %v237_v30 = vadd.f32 %v954_v21, %v236_v28 }
 0x151   :  { %v241_v32 = vsel %vm240_vm9, %v954_v21, %v237_v30 }
 0x152   :  { %v246_v33 = vsel %vm243_vm10, %v245_v31, %v241_v32 }
 0x153   :  { %v247_v34 = vmul.f32 %v950_v2, %v246_v33 }
 0x155   :  { %914 = vmatmul.msk.f32.vlgmr.msrb.gmra.mxu0 %vm183_vm2, %v247_v34 }
 0x17e   :  { %v416_v55 = vpop.permute.xlu2 %415 }
 0x17f   :  { %436 = vmatpush.msrb.mxu3 %v416_v55 }
 0x186   :  { %v319_v35 = vpop.f32.mrf.mxu1  ;;  %v443_v10 = vpop.permute.xlu2 %442 }
 0x187   :  { %v350_v36 = vsel %vm183_vm2, %v319_v35, -inf  ;;  %463 = vmatpush.msra.mxu0 %v443_v10 }
 0x188   :  { %v351_v37 = vrot.slane %v350_v36, 4 }
 0x18a   :  { %v352_v38 = vmax.f32 %v350_v36, %v351_v37 }
 0x18c   :  { %v353_v39 = vrot.slane %v352_v38, 2 }
 0x18e   :  { %v354_v40 = vmax.f32 %v352_v38, %v353_v39  ;;  %v347_v41 = vpop.f32.mrf.mxu1 }
 0x18f   :  { %v357_v42 = vsel %vm183_vm2, %v347_v41, -inf }
 0x190   :  { %v355_v43 = vrot.slane %v354_v40, 1  ;;  %v358_v44 = vrot.slane %v357_v42, 4 }
 0x192   :  { %v356_v45 = vmax.f32 %v354_v40, %v355_v43  ;;  %v359_v46 = vmax.f32 %v357_v42, %v358_v44 }
 0x194   :  { %v364_v47 = vsub.f32 %v319_v35, %v356_v45  ;;  %v360_v48 = vrot.slane %v359_v46, 2 }
 0x195   :  { %v589_v15 = vpop.permute.xlu1 %588 }
 0x196   :  { %v366_v49 = vmul.f32 1.442695, %v364_v47  ;;  %v361_v50 = vmax.f32 %v359_v46, %v360_v48  ;;  %v493_v51 = vpop.f32.mrf.mxu1  ;;  %609 = vmatpush.msra.mxu3 %v589_v15 }
 0x197   :  { %v524_v52 = vsel %vm183_vm2, %v493_v51, -inf  ;;  %v521_v53 = vpop.f32.mrf.mxu2 }
 0x198   :  { %955 = vpow2.f32 %v366_v49  ;;  %v362_v56 = vrot.slane %v361_v50, 1  ;;  %v525_v57 = vrot.slane %v524_v52, 4  ;;  %v531_v58 = vsel %vm183_vm2, %v521_v53, -inf }
 0x199   :  { %v532_v59 = vrot.slane %v531_v58, 4 }
 0x19a   :  { %v363_v60 = vmax.f32 %v361_v50, %v362_v56  ;;  %v526_v62 = vmax.f32 %v524_v52, %v525_v57 }
 0x19b   :  { %v533_v63 = vmax.f32 %v531_v58, %v532_v59 }
 0x19c   :  { %v365_v0 = vsub.f32 %v347_v41, %v363_v60  ;;  %v527_v1 = vrot.slane %v526_v62, 2 }
 0x19d   :  { %v534_v2 = vrot.slane %v533_v63, 2  ;;  %v615_v36 = vpop.permute.xlu1 %614 }
 0x19e   :  { %v1154_v3 = vpop.eup %955  ;;  %v368_v4 = vmul.f32 1.442695, %v365_v0  ;;  %v528_v5 = vmax.f32 %v526_v62, %v527_v1  ;;  %v665_v6 = vpop.f32.mrf.mxu1  ;;  %635 = vmatpush.msrb.mxu0 %v615_v36 }
 0x19f   :  { %v370_v7 = vsel %vm183_vm2, %v1154_v3, 0.0  ;;  %v535_v8 = vmax.f32 %v533_v63, %v534_v2  ;;  %v696_v9 = vsel %vm183_vm2, %v665_v6, -inf }
 0x1a0   :  { %v371_v11 = vrot.slane %v370_v7, 4  ;;  %957 = vpow2.f32 %v368_v4  ;;  %v529_v12 = vrot.slane %v528_v5, 1  ;;  %v697_v13 = vrot.slane %v696_v9, 4 }
 0x1a1   :  { %v536_v14 = vrot.slane %v535_v8, 1 }
 0x1a2   :  { %v372_v16 = vadd.f32 %v371_v11, %v370_v7  ;;  %v530_v17 = vmax.f32 %v528_v5, %v529_v12  ;;  %v698_v18 = vmax.f32 %v696_v9, %v697_v13 }
 0x1a3   :  { %v537_v19 = vmax.f32 %v535_v8, %v536_v14 }
 0x1a4   :  { %v373_v20 = vrot.slane %v372_v16, 2  ;;  %v538_v21 = vsub.f32 %v493_v51, %v530_v17  ;;  %v699_v22 = vrot.slane %v698_v18, 2 }
 0x1a5   :  { %v539_v23 = vsub.f32 %v521_v53, %v537_v19 }
 0x1a6   :  { %v1159_v24 = vpop.eup %957  ;;  %v374_v25 = vadd.f32 %v373_v20, %v372_v16  ;;  %v540_v26 = vmul.f32 1.442695, %v538_v21  ;;  %v700_v27 = vmax.f32 %v698_v18, %v699_v22  ;;  %v693_v28 = vpop.f32.mrf.mxu2 }
 0x1a7   :  { %v377_v29 = vsel %vm183_vm2, %v1159_v24, 0.0  ;;  %v542_v30 = vmul.f32 1.442695, %v539_v23  ;;  %v703_v31 = vsel %vm183_vm2, %v693_v28, -inf }
 0x1a8   :  { %v375_v32 = vrot.slane %v374_v25, 1  ;;  %v378_v33 = vrot.slane %v377_v29, 4  ;;  %959 = vpow2.f32 %v540_v26  ;;  %v701_v34 = vrot.slane %v700_v27, 1 }
 0x1a9   :  { %961 = vpow2.f32 %v542_v30  ;;  %v704_v35 = vrot.slane %v703_v31, 4 }
 0x1aa   :  { %v376_v37 = vadd.f32 %v375_v32, %v374_v25  ;;  %v379_v38 = vadd.f32 %v378_v33, %v377_v29  ;;  %v702_v39 = vmax.f32 %v700_v27, %v701_v34  ;;  %v761_v25 = vpop.permute.xlu0 %760 }
 0x1ab   :  { %v705_v40 = vmax.f32 %v703_v31, %v704_v35 }
 0x1ac   :  { %963 = vrcp.f32 %v376_v37  ;;  %v380_v41 = vrot.slane %v379_v38, 2  ;;  %v710_v42 = vsub.f32 %v665_v6, %v702_v39  ;;  %v395_v1 = vand.u32 2147483648, %v376_v37 }
 0x1ad   :  { %v706_v43 = vrot.slane %v705_v40, 2  ;;  %v393_v8 = vand.u32 2147483647, %v376_v37  ;;  %vm389_vm12 = vweird.f32 %v376_v37 }
 0x1ae   :  { %v1164_v44 = vpop.eup %959  ;;  %v381_v46 = vadd.f32 %v380_v41, %v379_v38  ;;  %v712_v48 = vmul.f32 1.442695, %v710_v42  ;;  %v396_v15 = vor.u32 1.1754944e-38, %v395_v1 }
 0x1af   :  { %v1166_v45 = vpop.eup %961  ;;  %v544_v47 = vsel %vm183_vm2, %v1164_v44, 0.0  ;;  %v707_v49 = vmax.f32 %v705_v40, %v706_v43  ;;  %vm394_vm14 = vcmp.eq.f32.partialorder %v393_v8, 8.507059e+37 }
 0x1b0   :  { %v545_v50 = vrot.slane %v544_v47, 4  ;;  %v551_v51 = vsel %vm183_vm2, %v1166_v45, 0.0  ;;  %v382_v52 = vrot.slane %v381_v46, 1  ;;  %965 = vpow2.f32 %v712_v48 }
 0x1b1   :  { %v552_v53 = vrot.slane %v551_v51, 4  ;;  %v708_v55 = vrot.slane %v707_v49, 1 }
 0x1b2   :  { %v964_v56 = vpop.eup %963  ;;  %v546_v57 = vadd.f32 %v545_v50, %v544_v47  ;;  %v383_v59 = vadd.f32 %v382_v52, %v381_v46 }
 0x1b3   :  { %v385_v58 = vmul.f32 %v964_v56, %v376_v37  ;;  %v553_v60 = vadd.f32 %v552_v53, %v551_v51  ;;  %v709_v63 = vmax.f32 %v707_v49, %v708_v55  ;;  %vm390_vm11 = vweird.f32 %v964_v56  ;;  %v787_v55 = vpop.permute.xlu2 %786 }
 0x1b4   :  { %v547_v62 = vrot.slane %v546_v57, 2  ;;  %967 = vrcp.f32 %v383_v59  ;;  %vm391_vm13 = vmor %vm389_vm12, %vm390_vm11  ;;  %v410_v29 = vand.u32 2147483648, %v383_v59  ;;  %v408_v31 = vand.u32 2147483647, %v383_v59 }
 0x1b5   :  { %v386_v0 = vsub.f32 1.0, %v385_v58  ;;  %v554_v4 = vrot.slane %v553_v60, 2  ;;  %v711_v5 = vsub.f32 %v693_v28, %v709_v63  ;;  %vm404_vm3 = vweird.f32 %v383_v59 }
 0x1b6   :  { %v548_v2 = vadd.f32 %v547_v62, %v546_v57  ;;  %v1172_v6 = vpop.eup %965  ;;  %v411_v36 = vor.u32 1.1754944e-38, %v410_v29  ;;  %vm409_vm5 = vcmp.eq.f32.partialorder %v408_v31, 8.507059e+37 }
 0x1b7   :  { %v387_v7 = vmul.f32 %v964_v56, %v386_v0  ;;  %v555_v10 = vadd.f32 %v554_v4, %v553_v60  ;;  %v716_v11 = vsel %vm183_vm2, %v1172_v6, 0.0  ;;  %v714_v14 = vmul.f32 1.442695, %v711_v5 }
 0x1b8   :  { %v549_v9 = vrot.slane %v548_v2, 1  ;;  %v717_v13 = vrot.slane %v716_v11, 4 }
 0x1b9   :  { %v388_v12 = vadd.f32 %v964_v56, %v387_v7  ;;  %v556_v17 = vrot.slane %v555_v10, 1  ;;  %969 = vpow2.f32 %v714_v14 }
 0x1ba   :  { %v550_v16 = vadd.f32 %v549_v9, %v548_v2  ;;  %v968_v18 = vpop.eup %967  ;;  %v718_v20 = vadd.f32 %v717_v13, %v716_v11 }
 0x1bb   :  { %v392_v19 = vsel %vm391_vm13, %v964_v56, %v388_v12  ;;  %v400_v22 = vmul.f32 %v968_v18, %v383_v59  ;;  %v557_v27 = vadd.f32 %v556_v17, %v555_v10  ;;  %vm405_vm15 = vweird.f32 %v968_v18 }
 0x1bc   :  { %v397_v21 = vsel %vm394_vm14, %v396_v15, %v392_v19  ;;  %971 = vrcp.f32 %v550_v16  ;;  %v719_v28 = vrot.slane %v718_v20, 2  ;;  %vm406_vm4 = vmor %vm404_vm3, %vm405_vm15  ;;  %v567_v48 = vand.u32 2147483647, %v550_v16 }
 0x1bd   :  { %v398_v23 = vmul.f32 %v1154_v3, %v397_v21  ;;  %v401_v26 = vsub.f32 1.0, %v400_v22  ;;  %973 = vrcp.f32 %v557_v27  ;;  %v569_v49 = vand.u32 2147483648, %v550_v16 }
 0x1be   :  { %v720_v33 = vadd.f32 %v719_v28, %v718_v20  ;;  %vm563_vm7 = vweird.f32 %v550_v16  ;;  %vm568_vm9 = vcmp.eq.f32.partialorder %v567_v48, 8.507059e+37  ;;  %v584_v59 = vand.u32 2147483648, %v557_v27 }
 0x1bf   :  { %919 = vmatmul.msk.f32.vlgmr.msrb.gmra.mxu3 %vm183_vm2, %v398_v23  ;;  %v402_v30 = vmul.f32 %v968_v18, %v401_v26  ;;  %v1178_v32 = vpop.eup %969  ;;  %v570_v58 = vor.u32 1.1754944e-38, %v569_v49  ;;  %v582_v63 = vand.u32 2147483647, %v557_v27  ;;  %vm578_vm11 = vweird.f32 %v557_v27 }
 0x1c0   :  { %781 = vmatpush.msrb.mxu3 %v761_v25  ;;  %v723_v3 = vsel %vm183_vm2, %v1178_v32, 0.0  ;;  %v721_v38 = vrot.slane %v720_v33, 1  ;;  %v585_v7 = vor.u32 1.1754944e-38, %v584_v59 }
 0x1c1   :  { %v403_v35 = vadd.f32 %v968_v18, %v402_v30  ;;  %v724_v40 = vrot.slane %v723_v3, 4  ;;  %vm583_vm13 = vcmp.eq.f32.partialorder %v582_v63, 8.507059e+37 }
 0x1c2   :  { %v972_v34 = vpop.eup %971  ;;  %v722_v43 = vadd.f32 %v721_v38, %v720_v33 }
 0x1c3   :  { %v559_v37 = vmul.f32 %v972_v34, %v550_v16  ;;  %v407_v39 = vsel %vm406_vm4, %v968_v18, %v403_v35  ;;  %v974_v46 = vpop.eup %973  ;;  %v725_v50 = vadd.f32 %v724_v40, %v723_v3  ;;  %vm564_vm6 = vweird.f32 %v972_v34  ;;  %v848_v40 = vld [vmem:[%s1232_s5 + $0x28] sm:$0xff] }
 0x1c4   :  { %v412_v41 = vsel %vm409_vm5, %v411_v36, %v407_v39  ;;  %v574_v52 = vmul.f32 %v974_v46, %v557_v27  ;;  %975 = vrcp.f32 %v722_v43  ;;  %vm565_vm8 = vmor %vm563_vm7, %vm564_vm6  ;;  %vm579_vm10 = vweird.f32 %v974_v46  ;;  %v849_v39 = vld [vmem:[%s1232_s5 + $0x30] sm:$0xff] }
 0x1c5   :  { %v560_v42 = vsub.f32 1.0, %v559_v37  ;;  %v413_v47 = vmul.f32 %v1159_v24, %v412_v41  ;;  %v726_v53 = vrot.slane %v725_v50, 2  ;;  %vm580_vm12 = vmor %vm578_vm11, %vm579_vm10  ;;  %v741_v14 = vand.u32 2147483648, %v722_v43  ;;  %v847_v41 = vld [vmem:[%s1232_s5 + $0x20] sm:$0xff] }
 0x1c6   :  { %v575_v57 = vsub.f32 1.0, %v574_v52  ;;  %v739_v16 = vand.u32 2147483647, %v722_v43  ;;  %vm735_vm15 = vweird.f32 %v722_v43 }
 0x1c7   :  { %v561_v51 = vmul.f32 %v972_v34, %v560_v42  ;;  %920 = vmatmul.msk.f32.vlgmr.msra.gmra.mxu0 %vm183_vm2, %v413_v47  ;;  %v727_v24 = vadd.f32 %v726_v53, %v725_v50  ;;  %v742_v17 = vor.u32 1.1754944e-38, %v741_v14  ;;  %v846_v42 = vld [vmem:[%s1232_s5 + $0x18] sm:$0xff]  ;;  %v843_v47 = vld [vmem:[%s1232_s5] sm:$0xff] }
 0x1c8   :  { %807 = vmatpush.msra.mxu0 %v787_v55  ;;  %v576_v62 = vmul.f32 %v974_v46, %v575_v57  ;;  %vm740_vm4 = vcmp.eq.f32.partialorder %v739_v16, 8.507059e+37 }
 0x1c9   :  { %v562_v56 = vadd.f32 %v972_v34, %v561_v51  ;;  %v728_v1 = vrot.slane %v727_v24, 1 }
 0x1ca   :  { %v976_v2 = vpop.eup %975  ;;  %v577_v5 = vadd.f32 %v974_v46, %v576_v62 }
 0x1cb   :  { %v566_v60 = vsel %vm565_vm8, %v972_v34, %v562_v56  ;;  %v731_v8 = vmul.f32 %v976_v2, %v722_v43  ;;  %v729_v9 = vadd.f32 %v728_v1, %v727_v24  ;;  %vm736_vm14 = vweird.f32 %v976_v2  ;;  %v845_v43 = vld [vmem:[%s1232_s5 + $0x10] sm:$0xff] }
 0x1cc   :  { %v571_v0 = vsel %vm568_vm9, %v570_v58, %v566_v60  ;;  %v581_v10 = vsel %vm580_vm12, %v974_v46, %v577_v5  ;;  %vm737_vm3 = vmor %vm735_vm15, %vm736_vm14  ;;  %v844_v46 = vld [vmem:[%s1232_s5 + $0x8] sm:$0xff]  ;;  %vm851_vm9 = vcmask 523264  }
 0x1cd   :  { %v572_v4 = vmul.f32 %v1164_v44, %v571_v0  ;;  %v586_v11 = vsel %vm583_vm13, %v585_v7, %v581_v10  ;;  %v732_v12 = vsub.f32 1.0, %v731_v8  ;;  %977 = vrcp.f32 %v729_v9 }
 0x1ce   :  { %v587_v13 = vmul.f32 %v1166_v45, %v586_v11  ;;  %v756_v25 = vand.u32 2147483648, %v729_v9  ;;  %v754_v26 = vand.u32 2147483647, %v729_v9  ;;  %vm750_vm6 = vweird.f32 %v729_v9 }
 0x1cf   :  { %925 = vmatmul.msk.f32.vlgmr.msra.gmra.mxu3 %vm183_vm2, %v572_v4  ;;  %v733_v15 = vmul.f32 %v976_v2, %v732_v12 }
 0x1d0   :  { %926 = vmatmul.msk.f32.vlgmr.msrb.gmra.mxu0 %vm183_vm2, %v587_v13  ;;  %v757_v28 = vor.u32 1.1754944e-38, %v756_v25  ;;  %vm755_vm8 = vcmp.eq.f32.partialorder %v754_v26, 8.507059e+37  ;;  %v268_v33 = vpop.f32.mrf.mxu3 }
 0x1d1   :  { %v734_v44 = vadd.f32 %v976_v2, %v733_v15 }
 0x1d3   :  { %v978_v18 = vpop.eup %977  ;;  %v738_v19 = vsel %vm737_vm3, %v976_v2, %v734_v44 }
 0x1d4   :  { %v743_v20 = vsel %vm740_vm4, %v742_v17, %v738_v19  ;;  %v746_v21 = vmul.f32 %v978_v18, %v729_v9  ;;  %vm751_vm5 = vweird.f32 %v978_v18 }
 0x1d5   :  { %v744_v22 = vmul.f32 %v1172_v6, %v743_v20  ;;  %vm752_vm7 = vmor %vm750_vm6, %vm751_vm5  ;;  %v291_v6 = vpop.f32.mrf.mxu0 }
 0x1d6   :  { %v747_v23 = vsub.f32 1.0, %v746_v21 }
 0x1d7   :  { %931 = vmatmul.msk.f32.vlgmr.msrb.gmra.mxu3 %vm183_vm2, %v744_v22 }
 0x1d8   :  { %v748_v45 = vmul.f32 %v978_v18, %v747_v23 }
 0x1da   :  { %v749_v27 = vadd.f32 %v978_v18, %v748_v45 }
 0x1dc   :  { %v753_v29 = vsel %vm752_vm7, %v978_v18, %v749_v27 }
 0x1dd   :  { %v758_v30 = vsel %vm755_vm8, %v757_v28, %v753_v29 }
 0x1de   :  { %v759_v31 = vmul.f32 %v1178_v32, %v758_v30  ;;  %v850_v32 = vld [vmem:[%s1232_s5 + $0x38] sm:$0xff]  ;;  %s1012_s5 = smov [#allocation2]  }
 0x1df   :  { %866 = vmatpush.msra.mxu1 %v850_v32  ;;  %s889_s0 = sshll.u32 %s1012_s5, 4  ;;  %s890_s0 = int_to_ptr.vmem [resolvable:$true] %s889_s0 }
 0x1e0   :  { %932 = vmatmul.msk.f32.vlgmr.msra.gmra.mxu0 %vm183_vm2, %v759_v31  ;;  %vm840_vm2 = vcmask 392192  }
 0x1e1   :  { %867 = vmatpush.msra.mxu1 %v849_v39 }
 0x1e3   :  { %868 = vmatpush.msra.mxu1 %v848_v40 }
 0x1e5   :  { %869 = vmatpush.msra.mxu1 %v847_v41 }
 0x1e7   :  { %870 = vmatpush.msra.mxu1 %v846_v42 }
 0x1e9   :  { %871 = vmatpush.msra.mxu1 %v845_v43 }
 0x1eb   :  { %872 = vmatpush.msra.mxu1 %v844_v46 }
 0x1ed   :  { %873 = vmatpush.msra.mxu1 %v843_v47 }
 0x242   :  { %v438_v34 = vpop.f32.mrf.mxu3 }
 0x243   :  { %814 = vrot.lane.b32.xlu0 %v438_v34, %s1009_s1 }
 0x244   :  { %v465_v35 = vpop.f32.mrf.mxu0 }
 0x24b   :  { %816 = vrot.lane.b32.xlu0 %v465_v35, %s1009_s1 }
 0x24d   :  { %v637_v36 = vpop.f32.mrf.mxu0 }
 0x252   :  { %v611_v3 = vpop.f32.mrf.mxu3 }
 0x253   :  { %822 = vrot.lane.b32.xlu1 %v611_v3, %s1010_s28 }
 0x25a   :  { %v783_v37 = vpop.f32.mrf.mxu3 }
 0x25b   :  { %824 = vrot.lane.b32.xlu1 %v637_v36, %s1010_s28  ;;  %830 = vrot.lane.b32.xlu2 %v783_v37, %s1011_s29 }
 0x25d   :  { %v809_v38 = vpop.f32.mrf.mxu0 }
 0x263   :  { %832 = vrot.lane.b32.xlu2 %v809_v38, %s1011_s29 }
 0x2b5   :  { %v815_v48 = vpop.permute.xlu0 %814  ;;  %v831_v49 = vpop.permute.xlu2 %830 }
 0x2b6   :  { %v836_v50 = vsel %vm130_vm1, %v268_v33, %v815_v48 }
 0x2bd   :  { %v817_v55 = vpop.permute.xlu0 %816  ;;  %v833_v58 = vpop.permute.xlu2 %832 }
 0x2be   :  { %v837_v56 = vsel %vm130_vm1, %v291_v6, %v817_v55 }
 0x2c5   :  { %v823_v51 = vpop.permute.xlu1 %822 }
 0x2c6   :  { %v838_v52 = vsel %vm32_vm0, %v836_v50, %v823_v51 }
 0x2c7   :  { %v841_v53 = vsel %vm840_vm2, %v838_v52, %v831_v49 }
 0x2c8   :  { %933 = vmatmul.msk.f32.vlgmr.msra.gmra.mxu1 %vm851_vm9, %v841_v53 }
 0x2cd   :  { %v825_v57 = vpop.permute.xlu1 %824 }
 0x2ce   :  { %v839_v59 = vsel %vm32_vm0, %v837_v56, %v825_v57 }
 0x2cf   :  { %v842_v24 = vsel %vm840_vm2, %v839_v59, %v833_v58 }
 0x2d0   :  { %934 = vmatmul.msk.f32.gmra.mxu1 %vm851_vm9, %v842_v24 }
 0x345   :  { %v875_v60 = vpop.f32.mrf.mxu1 }
 0x346   :  { %v881_v62 = vmul.f32 %v875_v60, %v1134_v54 }
 0x348   :  { %883 = vst.msk [vmem:[#allocation2] sm:$0xff] %vm32_vm0, %v881_v62 }
 0x34d   :  { %v878_v63 = vpop.f32.mrf.mxu1 }
 0x34e   :  { %v882_v0 = vmul.f32 %v878_v63, %v1141_v61 }
 0x350   :  { %884 = vst.msk [vmem:[#allocation2 + $0x8] sm:$0xff] %vm32_vm0, %v882_v0 }
 0x351   :  { %897 = dma.vmem_to_hbm [thread:$0]  %s890_s0, 256, %s892_s22, [#allocation3], %s1013_s23, %s1013_s23, %s1014_s4  }
 0x352   :  { %1003 = dma.done.wait [#allocation3], 256  }
 0x353   :  { %1004 = vsyncadd [#allocation3], 4294967040 }
 0x354   :  { %902 = vsyncpa [#allocation3], 1 }

</bundles_post_ra>
